<compile_context>
chip_gen: v7x
topology: tpu7x:2x2x1
jax: 0.10.0
libtpu: 0.0.40
codegen_flags: <defaults>
</compile_context>

<pallas_src>
import numpy as np
import jax
import jax.numpy as jnp
from jax.experimental import pallas as pl
from jax.experimental.pallas import tpu as pltpu


def fused_cnn_kernel(x_ref, wk_ref, bc_ref, srow_ref, scol_ref,
                     wf_ref, bf_ref, o_ref):
    """One batch element per grid step; all intermediates stay in VMEM/vregs.

    x_ref   : (1, H, W*C)        image, lane axis = (w, c) interleaved
    wk_ref  : (K, W*C, Wo*F)     block-Toeplitz conv weights, one slab per kh
    bc_ref  : (1, Wo*F)          conv bias tiled over wo
    srow_ref: (2, Hp, Ho)        0/1 even/odd output-row pair selectors
    scol_ref: (2, Wo*F, Wp*F)    0/1 even/odd wo pair selectors (identity over f)
    wf_ref  : (Hp, Wp*F, n_cls)  FC weight with NCHW-flatten permutation folded in
    bf_ref  : (1, n_cls)         FC bias
    o_ref   : (1, 1, n_cls)      softmax probabilities
    """
    K = wk_ref.shape[0]
    Hp = srow_ref.shape[1]

    xn = x_ref[0]                                        # (H, W*C)
    Ho = srow_ref.shape[2]

    # conv1 + bias + ReLU: K row-shifted MXU matmuls -> (Ho, Wo*F), lane-dense.
    acc = jnp.dot(xn[0:Ho, :], wk_ref[0], preferred_element_type=jnp.float32)
    for kh in range(1, K):
        acc = acc + jnp.dot(xn[kh:kh + Ho, :], wk_ref[kh],
                            preferred_element_type=jnp.float32)
    acc = jnp.maximum(acc + bc_ref[...], 0.0)            # (Ho, Wo*F)

    # MaxPool2d(2,2): pair-max over output rows, then over wo inside the
    # interleaved (wo, f) lane axis; both via 0/1 selection matmuls (MXU)
    # followed by elementwise max (VPU).
    zh = jnp.maximum(
        jnp.dot(srow_ref[0], acc, preferred_element_type=jnp.float32),
        jnp.dot(srow_ref[1], acc, preferred_element_type=jnp.float32))   # (Hp, Wo*F)
    zp = jnp.maximum(
        jnp.dot(zh, scol_ref[0], preferred_element_type=jnp.float32),
        jnp.dot(zh, scol_ref[1], preferred_element_type=jnp.float32))    # (Hp, Wp*F)

    # Linear: contract over (hp, wp, f); NCHW permutation already folded into wf.
    logits = bf_ref[...]                                 # (1, n_cls)
    for hp in range(Hp):
        logits = logits + jnp.dot(zp[hp:hp + 1, :], wf_ref[hp],
                                  preferred_element_type=jnp.float32)

    # Numerically stable softmax; reciprocal on the EUP + one Newton step.
    m = jnp.max(logits, axis=-1, keepdims=True)
    e = jnp.exp(logits - m)
    s = jnp.sum(e, axis=-1, keepdims=True)
    r = pl.reciprocal(s, approx=True)
    r = r * (2.0 - s * r)                                # refine -> ~f32 exact
    o_ref[0] = (e * r).astype(o_ref.dtype)


def cnn_forward(images, conv_w, conv_b, fc_w, fc_b):
    """images: (N, C, H, W) f32; conv_w: (F, C, K, K); fc_w: (n_classes, F*Hp*Wp)."""
    N, C, H, W = images.shape
    F = conv_w.shape[0]
    K = conv_w.shape[2]
    Ho, Wo = H - K + 1, W - K + 1
    Hp, Wp = (Ho - 2) // 2 + 1, (Wo - 2) // 2 + 1
    n_classes = fc_w.shape[0]

    # --- activations: single cheap relayout NCHW -> (N, H, (w, c)) ---
    x3 = images.transpose(0, 2, 3, 1).reshape(N, H, W * C)

    # --- conv weights -> per-kh block-Toeplitz matrices over (w, c) -> (wo, f) ---
    # wk[kh, w*C + c, wo*F + f] = conv_w[f, c, kh, w - wo]  if 0 <= w - wo < K else 0
    w_t = conv_w.transpose(2, 3, 1, 0)                        # (K, K, C, F)
    delta = np.arange(W)[:, None] - np.arange(Wo)[None, :]    # (W, Wo): kw = w - wo
    valid = ((delta >= 0) & (delta < K)).astype(np.float32)
    d_clip = np.clip(delta, 0, K - 1)
    wk = w_t[:, d_clip, :, :]                                 # (K, W, Wo, C, F)
    wk = wk * jnp.asarray(valid)[None, :, :, None, None]
    wk = wk.transpose(0, 1, 3, 2, 4).reshape(K, W * C, Wo * F)

    bc = jnp.tile(conv_b, Wo).reshape(1, Wo * F)              # bias per (wo, f)

    # --- max-pool selection matrices (compile-time constants) ---
    srow = np.zeros((2, Hp, Ho), np.float32)                  # even / odd output rows
    srow[0, np.arange(Hp), 2 * np.arange(Hp)] = 1.0
    srow[1, np.arange(Hp), 2 * np.arange(Hp) + 1] = 1.0
    pe = np.zeros((Wo, Wp), np.float32)
    pe[2 * np.arange(Wp), np.arange(Wp)] = 1.0
    po = np.zeros((Wo, Wp), np.float32)
    po[2 * np.arange(Wp) + 1, np.arange(Wp)] = 1.0
    eye_f = np.eye(F, dtype=np.float32)
    scol = np.stack([np.kron(pe, eye_f), np.kron(po, eye_f)])  # (2, Wo*F, Wp*F)

    # --- FC weight with the PyTorch NCHW-flatten permutation folded in ---
    # wf[hp, wp*F + f, cls] = fc_w[cls, f*Hp*Wp + hp*Wp + wp]
    wf = fc_w.reshape(n_classes, F, Hp, Wp).transpose(2, 3, 1, 0)
    wf = wf.reshape(Hp, Wp * F, n_classes)
    bf = fc_b.reshape(1, n_classes)

    out = pl.pallas_call(
        fused_cnn_kernel,
        out_shape=jax.ShapeDtypeStruct((N, 1, n_classes), jnp.float32),
        grid_spec=pltpu.PrefetchScalarGridSpec(
            num_scalar_prefetch=0,
            grid=(N,),
            in_specs=[
                pl.BlockSpec((1, H, W * C), lambda i: (i, 0, 0)),
                pl.BlockSpec((K, W * C, Wo * F), lambda i: (0, 0, 0)),
                pl.BlockSpec((1, Wo * F), lambda i: (0, 0)),
                pl.BlockSpec((2, Hp, Ho), lambda i: (0, 0, 0)),
                pl.BlockSpec((2, Wo * F, Wp * F), lambda i: (0, 0, 0)),
                pl.BlockSpec((Hp, Wp * F, n_classes), lambda i: (0, 0, 0)),
                pl.BlockSpec((1, n_classes), lambda i: (0, 0)),
            ],
            out_specs=pl.BlockSpec((1, 1, n_classes), lambda i: (i, 0, 0)),
        ),
        compiler_params=pltpu.CompilerParams(
            dimension_semantics=("parallel",)),
    )(x3, wk, bc, jnp.asarray(srow), jnp.asarray(scol), wf, bf)
    return out.reshape(N, n_classes)


def cnn_reference(images, conv_w, conv_b, fc_w, fc_b):
    """Pure-JAX reference with the same math as the PyTorch module."""
    hi = jax.lax.Precision.HIGHEST
    out = jax.lax.conv_general_dilated(
        images, conv_w, window_strides=(1, 1), padding="VALID",
        dimension_numbers=("NCHW", "OIHW", "NCHW"), precision=hi)
    out = jnp.maximum(out + conv_b[None, :, None, None], 0.0)
    n, f, ho, wo = out.shape
    hp, wp = ho // 2, wo // 2
    out = out[:, :, :hp * 2, :wp * 2].reshape(n, f, hp, 2, wp, 2).max(axis=(3, 5))
    feats = out.reshape(n, -1)
    logits = jnp.dot(feats, fc_w.T, precision=hi) + fc_b[None, :]
    return jax.nn.softmax(logits, axis=-1)


if __name__ == "__main__":
    # Small shapes consistent with the module: im_size=(4,16,16), hidden_dim=8,
    # kernel_size=3, n_classes=10, batch=2.
    N, C, H, W = 2, 4, 16, 16
    hidden_dim, kernel_size, n_classes = 8, 3, 10
    Ho, Wo = H - kernel_size + 1, W - kernel_size + 1
    Hp, Wp = (Ho - 2) // 2 + 1, (Wo - 2) // 2 + 1
    D = hidden_dim * Hp * Wp

    key = jax.random.PRNGKey(0)
    k1, k2, k3, k4, k5 = jax.random.split(key, 5)
    x = jax.random.normal(k1, (N, C, H, W), jnp.float32)
    conv_w = 0.1 * jax.random.normal(
        k2, (hidden_dim, C, kernel_size, kernel_size), jnp.float32)
    conv_b = 0.1 * jax.random.normal(k3, (hidden_dim,), jnp.float32)
    fc_w = 0.05 * jax.random.normal(k4, (n_classes, D), jnp.float32)
    fc_b = 0.05 * jax.random.normal(k5, (n_classes,), jnp.float32)

    fwd = jax.jit(cnn_forward)
    scores = jax.block_until_ready(fwd(x, conv_w, conv_b, fc_w, fc_b))
    ref = jax.block_until_ready(jax.jit(cnn_reference)(x, conv_w, conv_b, fc_w, fc_b))

    assert scores.shape == (N, n_classes)
    assert bool(jnp.all(jnp.isfinite(scores)))
    assert bool(jnp.allclose(jnp.sum(scores, axis=1), 1.0, atol=1e-4))  # valid softmax rows
    assert bool(jnp.allclose(scores, ref, atol=3e-3)), \
        float(jnp.max(jnp.abs(scores - ref)))
    print("KERNEL_OK")
</pallas_src>

<mosaic_0001>
module attributes {stable_mosaic.version = 11 : i64} {
  func.func @fused_cnn_kernel(%arg0: i32, %arg1: memref<1x16x64xf32, #tpu.memory_space<vmem>>, %arg2: memref<3x64x112xf32, #tpu.memory_space<vmem>>, %arg3: memref<1x112xf32, #tpu.memory_space<vmem>>, %arg4: memref<2x7x14xf32, #tpu.memory_space<vmem>>, %arg5: memref<2x112x56xf32, #tpu.memory_space<vmem>>, %arg6: memref<7x56x10xf32, #tpu.memory_space<vmem>>, %arg7: memref<1x10xf32, #tpu.memory_space<vmem>>, %arg8: memref<1x1x10xf32, #tpu.memory_space<vmem>>) attributes {dimension_semantics = [#tpu.dimension_semantics<parallel>], iteration_bounds = array<i64: 2>, scalar_prefetch = 0 : i64, scratch_operands = 0 : i64, tpu.core_type = #tpu.core_type<tc>, window_params = [{transform_indices = @transform_0, window_bounds = array<i64: 1, 16, 64>}, {pipeline_mode = #tpu.pipeline_mode<synchronous>, transform_indices = @transform_1, window_bounds = array<i64: 3, 64, 112>}, {pipeline_mode = #tpu.pipeline_mode<synchronous>, transform_indices = @transform_2, window_bounds = array<i64: 1, 112>}, {pipeline_mode = #tpu.pipeline_mode<synchronous>, transform_indices = @transform_3, window_bounds = array<i64: 2, 7, 14>}, {pipeline_mode = #tpu.pipeline_mode<synchronous>, transform_indices = @transform_4, window_bounds = array<i64: 2, 112, 56>}, {pipeline_mode = #tpu.pipeline_mode<synchronous>, transform_indices = @transform_5, window_bounds = array<i64: 7, 56, 10>}, {pipeline_mode = #tpu.pipeline_mode<synchronous>, transform_indices = @transform_6, window_bounds = array<i64: 1, 10>}, {transform_indices = @transform_7, window_bounds = array<i64: 1, 1, 10>}]} {
    %c0 = arith.constant 0 : index
    %c0_0 = arith.constant 0 : index
    %c0_1 = arith.constant 0 : index
    %0 = vector.load %arg1[%c0, %c0_0, %c0_1] : memref<1x16x64xf32, #tpu.memory_space<vmem>>, vector<1x16x64xf32>
    %1 = vector.shape_cast %0 : vector<1x16x64xf32> to vector<16x64xf32>
    %2 = vector.extract_strided_slice %1 {offsets = [0, 0], sizes = [14, 64], strides = [1, 1]} : vector<16x64xf32> to vector<14x64xf32>
    %c0_2 = arith.constant 0 : index
    %c0_3 = arith.constant 0 : index
    %c0_4 = arith.constant 0 : index
    %3 = vector.load %arg2[%c0_2, %c0_3, %c0_4] : memref<3x64x112xf32, #tpu.memory_space<vmem>>, vector<1x64x112xf32>
    %4 = vector.shape_cast %3 : vector<1x64x112xf32> to vector<64x112xf32>
    %cst = arith.constant dense<0.000000e+00> : vector<14x112xf32>
    %5 = tpu.matmul %2, %4, %cst {dimension_numbers = #tpu.dot_dimension_numbers<[1], [0], [0], [1], [0, 0, 1, 1], [], []>} : vector<14x64xf32>, vector<64x112xf32>, vector<14x112xf32> -> vector<14x112xf32>
    %6 = vector.extract_strided_slice %1 {offsets = [1, 0], sizes = [14, 64], strides = [1, 1]} : vector<16x64xf32> to vector<14x64xf32>
    %c1 = arith.constant 1 : index
    %c0_5 = arith.constant 0 : index
    %c0_6 = arith.constant 0 : index
    %7 = vector.load %arg2[%c1, %c0_5, %c0_6] : memref<3x64x112xf32, #tpu.memory_space<vmem>>, vector<1x64x112xf32>
    %8 = vector.shape_cast %7 : vector<1x64x112xf32> to vector<64x112xf32>
    %cst_7 = arith.constant dense<0.000000e+00> : vector<14x112xf32>
    %9 = tpu.matmul %6, %8, %cst_7 {dimension_numbers = #tpu.dot_dimension_numbers<[1], [0], [0], [1], [0, 0, 1, 1], [], []>} : vector<14x64xf32>, vector<64x112xf32>, vector<14x112xf32> -> vector<14x112xf32>
    %10 = arith.addf %5, %9 : vector<14x112xf32>
    %11 = vector.extract_strided_slice %1 {offsets = [2, 0], sizes = [14, 64], strides = [1, 1]} : vector<16x64xf32> to vector<14x64xf32>
    %c2 = arith.constant 2 : index
    %c0_8 = arith.constant 0 : index
    %c0_9 = arith.constant 0 : index
    %12 = vector.load %arg2[%c2, %c0_8, %c0_9] : memref<3x64x112xf32, #tpu.memory_space<vmem>>, vector<1x64x112xf32>
    %13 = vector.shape_cast %12 : vector<1x64x112xf32> to vector<64x112xf32>
    %cst_10 = arith.constant dense<0.000000e+00> : vector<14x112xf32>
    %14 = tpu.matmul %11, %13, %cst_10 {dimension_numbers = #tpu.dot_dimension_numbers<[1], [0], [0], [1], [0, 0, 1, 1], [], []>} : vector<14x64xf32>, vector<64x112xf32>, vector<14x112xf32> -> vector<14x112xf32>
    %15 = arith.addf %10, %14 : vector<14x112xf32>
    %c0_11 = arith.constant 0 : index
    %c0_12 = arith.constant 0 : index
    %16 = vector.load %arg3[%c0_11, %c0_12] : memref<1x112xf32, #tpu.memory_space<vmem>>, vector<1x112xf32>
    %17 = vector.broadcast %16 : vector<1x112xf32> to vector<14x112xf32>
    %18 = arith.addf %15, %17 : vector<14x112xf32>
    %cst_13 = arith.constant 0.000000e+00 : f32
    %19 = vector.broadcast %cst_13 : f32 to vector<14x112xf32>
    %20 = arith.maximumf %18, %19 : vector<14x112xf32>
    %c0_14 = arith.constant 0 : index
    %c0_15 = arith.constant 0 : index
    %c0_16 = arith.constant 0 : index
    %21 = vector.load %arg4[%c0_14, %c0_15, %c0_16] : memref<2x7x14xf32, #tpu.memory_space<vmem>>, vector<1x7x14xf32>
    %22 = vector.shape_cast %21 : vector<1x7x14xf32> to vector<7x14xf32>
    %cst_17 = arith.constant dense<0.000000e+00> : vector<7x112xf32>
    %23 = tpu.matmul %22, %20, %cst_17 {dimension_numbers = #tpu.dot_dimension_numbers<[1], [0], [0], [1], [0, 0, 1, 1], [], []>} : vector<7x14xf32>, vector<14x112xf32>, vector<7x112xf32> -> vector<7x112xf32>
    %c1_18 = arith.constant 1 : index
    %c0_19 = arith.constant 0 : index
    %c0_20 = arith.constant 0 : index
    %24 = vector.load %arg4[%c1_18, %c0_19, %c0_20] : memref<2x7x14xf32, #tpu.memory_space<vmem>>, vector<1x7x14xf32>
    %25 = vector.shape_cast %24 : vector<1x7x14xf32> to vector<7x14xf32>
    %cst_21 = arith.constant dense<0.000000e+00> : vector<7x112xf32>
    %26 = tpu.matmul %25, %20, %cst_21 {dimension_numbers = #tpu.dot_dimension_numbers<[1], [0], [0], [1], [0, 0, 1, 1], [], []>} : vector<7x14xf32>, vector<14x112xf32>, vector<7x112xf32> -> vector<7x112xf32>
    %27 = arith.maximumf %23, %26 : vector<7x112xf32>
    %c0_22 = arith.constant 0 : index
    %c0_23 = arith.constant 0 : index
    %c0_24 = arith.constant 0 : index
    %28 = vector.load %arg5[%c0_22, %c0_23, %c0_24] : memref<2x112x56xf32, #tpu.memory_space<vmem>>, vector<1x112x56xf32>
    %29 = vector.shape_cast %28 : vector<1x112x56xf32> to vector<112x56xf32>
    %cst_25 = arith.constant dense<0.000000e+00> : vector<7x56xf32>
    %30 = tpu.matmul %27, %29, %cst_25 {dimension_numbers = #tpu.dot_dimension_numbers<[1], [0], [0], [1], [0, 0, 1, 1], [], []>} : vector<7x112xf32>, vector<112x56xf32>, vector<7x56xf32> -> vector<7x56xf32>
    %c1_26 = arith.constant 1 : index
    %c0_27 = arith.constant 0 : index
    %c0_28 = arith.constant 0 : index
    %31 = vector.load %arg5[%c1_26, %c0_27, %c0_28] : memref<2x112x56xf32, #tpu.memory_space<vmem>>, vector<1x112x56xf32>
    %32 = vector.shape_cast %31 : vector<1x112x56xf32> to vector<112x56xf32>
    %cst_29 = arith.constant dense<0.000000e+00> : vector<7x56xf32>
    %33 = tpu.matmul %27, %32, %cst_29 {dimension_numbers = #tpu.dot_dimension_numbers<[1], [0], [0], [1], [0, 0, 1, 1], [], []>} : vector<7x112xf32>, vector<112x56xf32>, vector<7x56xf32> -> vector<7x56xf32>
    %34 = arith.maximumf %30, %33 : vector<7x56xf32>
    %c0_30 = arith.constant 0 : index
    %c0_31 = arith.constant 0 : index
    %35 = vector.load %arg7[%c0_30, %c0_31] : memref<1x10xf32, #tpu.memory_space<vmem>>, vector<1x10xf32>
    %36 = vector.extract_strided_slice %34 {offsets = [0, 0], sizes = [1, 56], strides = [1, 1]} : vector<7x56xf32> to vector<1x56xf32>
    %c0_32 = arith.constant 0 : index
    %c0_33 = arith.constant 0 : index
    %c0_34 = arith.constant 0 : index
    %37 = vector.load %arg6[%c0_32, %c0_33, %c0_34] : memref<7x56x10xf32, #tpu.memory_space<vmem>>, vector<1x56x10xf32>
    %38 = vector.shape_cast %37 : vector<1x56x10xf32> to vector<56x10xf32>
    %cst_35 = arith.constant dense<0.000000e+00> : vector<1x10xf32>
    %39 = tpu.matmul %36, %38, %cst_35 {dimension_numbers = #tpu.dot_dimension_numbers<[1], [0], [0], [1], [0, 0, 1, 1], [], []>} : vector<1x56xf32>, vector<56x10xf32>, vector<1x10xf32> -> vector<1x10xf32>
    %40 = arith.addf %35, %39 : vector<1x10xf32>
    %41 = vector.extract_strided_slice %34 {offsets = [1, 0], sizes = [1, 56], strides = [1, 1]} : vector<7x56xf32> to vector<1x56xf32>
    %c1_36 = arith.constant 1 : index
    %c0_37 = arith.constant 0 : index
    %c0_38 = arith.constant 0 : index
    %42 = vector.load %arg6[%c1_36, %c0_37, %c0_38] : memref<7x56x10xf32, #tpu.memory_space<vmem>>, vector<1x56x10xf32>
    %43 = vector.shape_cast %42 : vector<1x56x10xf32> to vector<56x10xf32>
    %cst_39 = arith.constant dense<0.000000e+00> : vector<1x10xf32>
    %44 = tpu.matmul %41, %43, %cst_39 {dimension_numbers = #tpu.dot_dimension_numbers<[1], [0], [0], [1], [0, 0, 1, 1], [], []>} : vector<1x56xf32>, vector<56x10xf32>, vector<1x10xf32> -> vector<1x10xf32>
    %45 = arith.addf %40, %44 : vector<1x10xf32>
    %46 = vector.extract_strided_slice %34 {offsets = [2, 0], sizes = [1, 56], strides = [1, 1]} : vector<7x56xf32> to vector<1x56xf32>
    %c2_40 = arith.constant 2 : index
    %c0_41 = arith.constant 0 : index
    %c0_42 = arith.constant 0 : index
    %47 = vector.load %arg6[%c2_40, %c0_41, %c0_42] : memref<7x56x10xf32, #tpu.memory_space<vmem>>, vector<1x56x10xf32>
    %48 = vector.shape_cast %47 : vector<1x56x10xf32> to vector<56x10xf32>
    %cst_43 = arith.constant dense<0.000000e+00> : vector<1x10xf32>
    %49 = tpu.matmul %46, %48, %cst_43 {dimension_numbers = #tpu.dot_dimension_numbers<[1], [0], [0], [1], [0, 0, 1, 1], [], []>} : vector<1x56xf32>, vector<56x10xf32>, vector<1x10xf32> -> vector<1x10xf32>
    %50 = arith.addf %45, %49 : vector<1x10xf32>
    %51 = vector.extract_strided_slice %34 {offsets = [3, 0], sizes = [1, 56], strides = [1, 1]} : vector<7x56xf32> to vector<1x56xf32>
    %c3 = arith.constant 3 : index
    %c0_44 = arith.constant 0 : index
    %c0_45 = arith.constant 0 : index
    %52 = vector.load %arg6[%c3, %c0_44, %c0_45] : memref<7x56x10xf32, #tpu.memory_space<vmem>>, vector<1x56x10xf32>
    %53 = vector.shape_cast %52 : vector<1x56x10xf32> to vector<56x10xf32>
    %cst_46 = arith.constant dense<0.000000e+00> : vector<1x10xf32>
    %54 = tpu.matmul %51, %53, %cst_46 {dimension_numbers = #tpu.dot_dimension_numbers<[1], [0], [0], [1], [0, 0, 1, 1], [], []>} : vector<1x56xf32>, vector<56x10xf32>, vector<1x10xf32> -> vector<1x10xf32>
    %55 = arith.addf %50, %54 : vector<1x10xf32>
    %56 = vector.extract_strided_slice %34 {offsets = [4, 0], sizes = [1, 56], strides = [1, 1]} : vector<7x56xf32> to vector<1x56xf32>
    %c4 = arith.constant 4 : index
    %c0_47 = arith.constant 0 : index
    %c0_48 = arith.constant 0 : index
    %57 = vector.load %arg6[%c4, %c0_47, %c0_48] : memref<7x56x10xf32, #tpu.memory_space<vmem>>, vector<1x56x10xf32>
    %58 = vector.shape_cast %57 : vector<1x56x10xf32> to vector<56x10xf32>
    %cst_49 = arith.constant dense<0.000000e+00> : vector<1x10xf32>
    %59 = tpu.matmul %56, %58, %cst_49 {dimension_numbers = #tpu.dot_dimension_numbers<[1], [0], [0], [1], [0, 0, 1, 1], [], []>} : vector<1x56xf32>, vector<56x10xf32>, vector<1x10xf32> -> vector<1x10xf32>
    %60 = arith.addf %55, %59 : vector<1x10xf32>
    %61 = vector.extract_strided_slice %34 {offsets = [5, 0], sizes = [1, 56], strides = [1, 1]} : vector<7x56xf32> to vector<1x56xf32>
    %c5 = arith.constant 5 : index
    %c0_50 = arith.constant 0 : index
    %c0_51 = arith.constant 0 : index
    %62 = vector.load %arg6[%c5, %c0_50, %c0_51] : memref<7x56x10xf32, #tpu.memory_space<vmem>>, vector<1x56x10xf32>
    %63 = vector.shape_cast %62 : vector<1x56x10xf32> to vector<56x10xf32>
    %cst_52 = arith.constant dense<0.000000e+00> : vector<1x10xf32>
    %64 = tpu.matmul %61, %63, %cst_52 {dimension_numbers = #tpu.dot_dimension_numbers<[1], [0], [0], [1], [0, 0, 1, 1], [], []>} : vector<1x56xf32>, vector<56x10xf32>, vector<1x10xf32> -> vector<1x10xf32>
    %65 = arith.addf %60, %64 : vector<1x10xf32>
    %66 = vector.extract_strided_slice %34 {offsets = [6, 0], sizes = [1, 56], strides = [1, 1]} : vector<7x56xf32> to vector<1x56xf32>
    %c6 = arith.constant 6 : index
    %c0_53 = arith.constant 0 : index
    %c0_54 = arith.constant 0 : index
    %67 = vector.load %arg6[%c6, %c0_53, %c0_54] : memref<7x56x10xf32, #tpu.memory_space<vmem>>, vector<1x56x10xf32>
    %68 = vector.shape_cast %67 : vector<1x56x10xf32> to vector<56x10xf32>
    %cst_55 = arith.constant dense<0.000000e+00> : vector<1x10xf32>
    %69 = tpu.matmul %66, %68, %cst_55 {dimension_numbers = #tpu.dot_dimension_numbers<[1], [0], [0], [1], [0, 0, 1, 1], [], []>} : vector<1x56xf32>, vector<56x10xf32>, vector<1x10xf32> -> vector<1x10xf32>
    %70 = arith.addf %65, %69 : vector<1x10xf32>
    %cst_56 = arith.constant dense<0xFF800000> : vector<1xf32>
    %71 = vector.multi_reduction <maximumf>, %70, %cst_56 [1] : vector<1x10xf32> to vector<1xf32>
    %72 = vector.shape_cast %71 : vector<1xf32> to vector<1x1xf32>
    %73 = vector.broadcast %72 : vector<1x1xf32> to vector<1x10xf32>
    %74 = arith.subf %70, %73 : vector<1x10xf32>
    %75 = math.exp %74 : vector<1x10xf32>
    %cst_57 = arith.constant dense<0.000000e+00> : vector<1xf32>
    %76 = vector.multi_reduction <add>, %75, %cst_57 [1] : vector<1x10xf32> to vector<1xf32>
    %77 = vector.shape_cast %76 : vector<1xf32> to vector<1x1xf32>
    %78 = tpu.reciprocal %77 {approx = true} : vector<1x1xf32> -> vector<1x1xf32>
    %79 = arith.mulf %77, %78 : vector<1x1xf32>
    %cst_58 = arith.constant 2.000000e+00 : f32
    %80 = vector.broadcast %cst_58 : f32 to vector<1x1xf32>
    %81 = arith.subf %80, %79 : vector<1x1xf32>
    %82 = arith.mulf %78, %81 : vector<1x1xf32>
    %83 = vector.broadcast %82 : vector<1x1xf32> to vector<1x10xf32>
    %84 = arith.mulf %75, %83 : vector<1x10xf32>
    %c0_59 = arith.constant 0 : index
    %c0_60 = arith.constant 0 : index
    %c0_61 = arith.constant 0 : index
    %85 = vector.load %arg8[%c0_59, %c0_60, %c0_61] : memref<1x1x10xf32, #tpu.memory_space<vmem>>, vector<1x1x10xf32>
    %86 = vector.shape_cast %85 : vector<1x1x10xf32> to vector<1x10xf32>
    %87 = vector.shape_cast %84 : vector<1x10xf32> to vector<1x1x10xf32>
    tpu.vector_store %arg8[%c0_59, %c0_60, %c0_61], %87 {strides = array<i32>} : memref<1x1x10xf32, #tpu.memory_space<vmem>>, vector<1x1x10xf32>,
    return
  }
  func.func @transform_0(%arg0: i32) -> (i32, i32, i32) {
    %c0_i32 = arith.constant 0 : i32
    %c0_i32_0 = arith.constant 0 : i32
    %c0_i32_1 = arith.constant 0 : i32
    return %arg0, %c0_i32, %c0_i32_0 : i32, i32, i32
  }
  func.func @transform_1(%arg0: i32) -> (i32, i32, i32) {
    %c0_i32 = arith.constant 0 : i32
    %c0_i32_0 = arith.constant 0 : i32
    %c0_i32_1 = arith.constant 0 : i32
    %c0_i32_2 = arith.constant 0 : i32
    return %c0_i32, %c0_i32_0, %c0_i32_1 : i32, i32, i32
  }
  func.func @transform_2(%arg0: i32) -> (i32, i32) {
    %c0_i32 = arith.constant 0 : i32
    %c0_i32_0 = arith.constant 0 : i32
    %c0_i32_1 = arith.constant 0 : i32
    return %c0_i32, %c0_i32_0 : i32, i32
  }
  func.func @transform_3(%arg0: i32) -> (i32, i32, i32) {
    %c0_i32 = arith.constant 0 : i32
    %c0_i32_0 = arith.constant 0 : i32
    %c0_i32_1 = arith.constant 0 : i32
    %c0_i32_2 = arith.constant 0 : i32
    return %c0_i32, %c0_i32_0, %c0_i32_1 : i32, i32, i32
  }
  func.func @transform_4(%arg0: i32) -> (i32, i32, i32) {
    %c0_i32 = arith.constant 0 : i32
    %c0_i32_0 = arith.constant 0 : i32
    %c0_i32_1 = arith.constant 0 : i32
    %c0_i32_2 = arith.constant 0 : i32
    return %c0_i32, %c0_i32_0, %c0_i32_1 : i32, i32, i32
  }
  func.func @transform_5(%arg0: i32) -> (i32, i32, i32) {
    %c0_i32 = arith.constant 0 : i32
    %c0_i32_0 = arith.constant 0 : i32
    %c0_i32_1 = arith.constant 0 : i32
    %c0_i32_2 = arith.constant 0 : i32
    return %c0_i32, %c0_i32_0, %c0_i32_1 : i32, i32, i32
  }
  func.func @transform_6(%arg0: i32) -> (i32, i32) {
    %c0_i32 = arith.constant 0 : i32
    %c0_i32_0 = arith.constant 0 : i32
    %c0_i32_1 = arith.constant 0 : i32
    return %c0_i32, %c0_i32_0 : i32, i32
  }
  func.func @transform_7(%arg0: i32) -> (i32, i32, i32) {
    %c0_i32 = arith.constant 0 : i32
    %c0_i32_0 = arith.constant 0 : i32
    %c0_i32_1 = arith.constant 0 : i32
    return %arg0, %c0_i32, %c0_i32_0 : i32, i32, i32
  }
}

</mosaic_0001>

<bundles_post_ra>
// kernel: tile.8
= control target key start
LH: loop header
LB: loop body
LE: loop exit
PB: predicated region body
PF: predicated region fallthrough
CT: control target
= control target key end

     0   :  { %s28_s0 = inlined_call_operand.vmem [shape: f32[8], index: 0, kind: input, shape index: {}]   ;;  %s29_s1 = inlined_call_operand.vmem [shape: f32[14,8], index: 1, kind: output, shape index: {}]  }
   0x1   :  { %v4_v0 = vld [vmem:[%s28_s0] ss:$0 sm:$0xff] }
   0x2   :  { %5 = vst [vmem:[%s29_s1] sm:$0xff] %v4_v0  ;;  %8 = vst [vmem:[%s29_s1 + $0x8] sm:$0xff] %v4_v0 }

// kernel: tile.9
= control target key start
LH: loop header
LB: loop body
LE: loop exit
PB: predicated region body
PF: predicated region fallthrough
CT: control target
= control target key end

     0   :  { %s115_s10 = smov 104   ;;  %s116_s11 = smov 88   ;;  %vm3_vm0 = vcmask 64512   ;;  %vm9_vm1 = vcmask 917312   ;;  %vm15_vm2 = vcmask 851712   ;;  %vm21_vm3 = vcmask 786112   ;;  %s183_s0 = inlined_call_operand.vmem [shape: f32[14,8], index: 0, kind: input, shape index: {}]   ;;  %s184_s1 = inlined_call_operand.vmem [shape: f32[1,112], index: 1, kind: output, shape index: {}]  }
   0x1   :  { %v89_v0 = vld [vmem:[%s183_s0 + $0xd] sm:$0x1]   ;;  %v91_v1 = vld [vmem:[%s183_s0 + $0xb] sm:$0x1]   ;;  %v90_v2 = vld [vmem:[%s183_s0 + $0xc] sm:$0x1]  }
   0x2   :  { %7 = vrot.lane.b32.xlu0 %v89_v0, %s115_s10  ;;  %19 = vrot.lane.b32.xlu1 %v91_v1, %s116_s11  ;;  %v92_v3 = vld [vmem:[%s183_s0 + $0xa] sm:$0x1]   ;;  %s117_s16 = smov 96   ;;  %s118_s17 = smov 80   ;;  %v93_v4 = vld [vmem:[%s183_s0 + $0x9] sm:$0x1]  }
   0x3   :  { %v94_v5 = vld [vmem:[%s183_s0 + $0x8] sm:$0x1]   ;;  %v2_v6 = vld [vmem:[%s183_s0] sm:$0x1]   ;;  %s119_s24 = smov 72   ;;  %s120_s25 = smov 64  }
   0x4   :  { %4 = vst.msk [vmem:[#allocation0] sm:$0x1] %vm3_vm0, %v2_v6   ;;  %v95_v7 = vld [vmem:[%s183_s0 + $0x7] sm:$0x1]   ;;  %v96_v8 = vld [vmem:[%s183_s0 + $0x6] sm:$0x1]  }
   0x5   :  { %s121_s30 = smov 56   ;;  %s122_s2 = smov 48   ;;  %v97_v9 = vld [vmem:[%s183_s0 + $0x5] sm:$0x1]   ;;  %v98_v10 = vld [vmem:[%s183_s0 + $0x4] sm:$0x1]  }
   0x6   :  { %13 = vrot.lane.b32.xlu0 %v90_v2, %s117_s16  ;;  %25 = vrot.lane.b32.xlu1 %v92_v3, %s118_s17  ;;  %s123_s7 = smov 40   ;;  %s124_s8 = smov 32   ;;  %v99_v11 = vld [vmem:[%s183_s0 + $0x3] sm:$0x1]   ;;  %v100_v12 = vld [vmem:[%s183_s0 + $0x2] sm:$0x1]  }
   0x7   :  { %s125_s13 = smov 24   ;;  %s126_s14 = smov 16   ;;  %v101_v13 = vld [vmem:[%s183_s0 + $0x1] sm:$0x1]   ;;  %vm27_vm4 = vcmask 720512   ;;  %vm33_vm5 = vcmask 654912  }
   0x8   :  { %s127_s0 = smov 8   ;;  %vm39_vm6 = vcmask 589312   ;;  %vm45_vm7 = vcmask 523712   ;;  %vm51_vm8 = vcmask 458112   ;;  %vm57_vm9 = vcmask 392512  }
   0x9   :  { %vm63_vm10 = vcmask 326912   ;;  %vm69_vm11 = vcmask 261312   ;;  %vm75_vm12 = vcmask 195712   ;;  %vm81_vm13 = vcmask 130112  }
   0xa   :  { %31 = vrot.lane.b32.xlu0 %v93_v4, %s119_s24  ;;  %37 = vrot.lane.b32.xlu1 %v94_v5, %s120_s25 }
   0xe   :  { %43 = vrot.lane.b32.xlu0 %v95_v7, %s121_s30  ;;  %49 = vrot.lane.b32.xlu1 %v96_v8, %s122_s2 }
  0x12   :  { %55 = vrot.lane.b32.xlu0 %v97_v9, %s123_s7  ;;  %61 = vrot.lane.b32.xlu1 %v98_v10, %s124_s8 }
  0x16   :  { %67 = vrot.lane.b32.xlu0 %v99_v11, %s125_s13  ;;  %73 = vrot.lane.b32.xlu1 %v100_v12, %s126_s14 }
  0x1a   :  { %79 = vrot.lane.b32.xlu0 %v101_v13, %s127_s0 }
  0x74   :  { %v8_v14 = vpop.permute.xlu0 %7   ;;  %v20_v15 = vpop.permute.xlu1 %19  }
  0x75   :  { %10 = vst.msk [vmem:[#allocation0] sm:$0x1] %vm9_vm1, %v8_v14  }
  0x78   :  { %v14_v16 = vpop.permute.xlu0 %13   ;;  %v26_v17 = vpop.permute.xlu1 %25  }
  0x79   :  { %16 = vst.msk [vmem:[#allocation0] sm:$0x1] %vm15_vm2, %v14_v16  }
  0x7a   :  { %22 = vst.msk [vmem:[#allocation0] sm:$0x1] %vm21_vm3, %v20_v15  }
  0x7b   :  { %28 = vst.msk [vmem:[#allocation0] sm:$0x1] %vm27_vm4, %v26_v17  }
  0x7c   :  { %v32_v18 = vpop.permute.xlu0 %31   ;;  %v38_v19 = vpop.permute.xlu1 %37  }
  0x7d   :  { %34 = vst.msk [vmem:[#allocation0] sm:$0x1] %vm33_vm5, %v32_v18  }
  0x7e   :  { %40 = vst.msk [vmem:[#allocation0] sm:$0x1] %vm39_vm6, %v38_v19  }
  0x80   :  { %v44_v20 = vpop.permute.xlu0 %43   ;;  %v50_v21 = vpop.permute.xlu1 %49  }
  0x81   :  { %46 = vst.msk [vmem:[#allocation0] sm:$0x1] %vm45_vm7, %v44_v20  }
  0x82   :  { %52 = vst.msk [vmem:[#allocation0] sm:$0x1] %vm51_vm8, %v50_v21  }
  0x84   :  { %v56_v22 = vpop.permute.xlu0 %55   ;;  %v62_v23 = vpop.permute.xlu1 %61  }
  0x85   :  { %58 = vst.msk [vmem:[#allocation0] sm:$0x1] %vm57_vm9, %v56_v22  }
  0x86   :  { %64 = vst.msk [vmem:[#allocation0] sm:$0x1] %vm63_vm10, %v62_v23  }
  0x88   :  { %v68_v24 = vpop.permute.xlu0 %67   ;;  %v74_v25 = vpop.permute.xlu1 %73  }
  0x89   :  { %70 = vst.msk [vmem:[#allocation0] sm:$0x1] %vm69_vm11, %v68_v24  }
  0x8a   :  { %76 = vst.msk [vmem:[#allocation0] sm:$0x1] %vm75_vm12, %v74_v25  }
  0x8c   :  { %v80_v26 = vpop.permute.xlu0 %79  }
  0x8d   :  { %82 = vst.msk [vmem:[#allocation0] sm:$0x1] %vm81_vm13, %v80_v26  }
  0x94   :  { %v86_v27 = vld [vmem:[#allocation0] sm:$0x1] }
  0x95   :  { %88 = vst [vmem:[%s184_s1] sm:$0x1] %v86_v27 }

// kernel: cnn_forward.1
= control target key start
LH: loop header
LB: loop body
LE: loop exit
PB: predicated region body
PF: predicated region fallthrough
CT: control target
= control target key end

     0   :  { %12 = vsyncpa [#allocation3], 0  ;;  %s2872_s0 = inlined_call_operand.vmem [shape: f32[2,16,64], index: 0, kind: input, shape index: {}]   ;;  %s2873_s1 = inlined_call_operand.vmem [shape: f32[3,64,112], index: 1, kind: input, shape index: {}]   ;;  %s2874_s2 = inlined_call_operand.vmem [shape: f32[1,112], index: 2, kind: input, shape index: {}]   ;;  %s2875_s3 = inlined_call_operand.vmem [shape: f32[2,7,14], index: 3, kind: input, shape index: {}]   ;;  %s2876_s4 = inlined_call_operand.vmem [shape: f32[2,112,56], index: 4, kind: input, shape index: {}]   ;;  %s2877_s5 = inlined_call_operand.vmem [shape: f32[7,56,10], index: 5, kind: input, shape index: {}]   ;;  %s2878_s6 = inlined_call_operand.vmem [shape: f32[1,10], index: 6, kind: input, shape index: {}]   ;;  %s2879_s7 = inlined_call_operand.hbm [shape: f32[2,1,10], index: 7, kind: output, shape index: {}]  }
   0x1   :  { %14 = vsyncpa [#allocation3 + $0x1], 0  ;;  %s2362_s24 = smov 0   ;;  %s2364_s25 = smov 0  }
   0x2   :  { %s2366_s26 = smov 0   ;;  %s2368_s27 = smov 0  }
   0x3 LB: > { %s2383_s28 = sadd.s32 4294967295, %s2315_s27   ;;  %s1552_s29 = sadd.s32 4294967294, %s2315_s27   ;;  %s2315_s27 = sphi %s2368_s27, %s2885_s27   ;;  %s2311_s26 = sphi %s2366_s26, %s2884_s26   ;;  %s2307_s25 = sphi %s2364_s25, %s2883_s25   ;;  %s2303_s24 = sphi %s2362_s24, %s2882_s24  }
   0x4   : > { %s2387_s30 = sadd.s32 1, %s2315_s27   ;;  %s179_s8 = sadd.s32 1, %s2311_s26 }
   0x5   : > { %s176_s9 = ssub.s32 %s2315_s27, %s2387_s30  ;;  %p189_p0 = scmp.ne.s32.totalorder %s2311_s26, %s2307_s25 }
   0x6   : > { %p177_p1 = scmp.eq.s32.totalorder %s176_s9, 0  ;;  %p190_p2 = scmp.eq.s32.totalorder %s2383_s28, 1 }
   0x7   : > { %p195_p3 = scmp.ne.s32.totalorder %s2307_s25, %s2303_s24  ;;  %p196_p4 = scmp.eq.s32.totalorder %s1552_s29, 1 }
   0x8   : > { %s2398_s10 = scalar_select %p177_p1, %s2311_s26, %s179_s8  }
   0x9   : > { %p2400_p5 = por %p190_p2, %p189_p0  ;;  %p2404_p6 = por %p196_p4, %p195_p3 }
   0xa   : > { %p1555_p7 = scmp.ge.s32.totalorder %s2315_s27, 1  ;;  %p240_p8 = scmp.lt.s32.totalorder %s2315_s27, 3 }
   0xc   : > { %p241_p9 = pnand %p1555_p7, %p240_p8 }
   0xd   : > { %v1558_v0 = vld [vmem:[%s2873_s1 + $0x40] sm:$0xff] (!%p241_p9)  ;;  %v1559_v1 = vld [vmem:[%s2873_s1 + $0x48] sm:$0xff] (!%p241_p9)  ;;  %v1560_v2 = vld [vmem:[%s2873_s1 + $0x50] sm:$0xff] (!%p241_p9)  ;;  %p271_p10 = scmp.lt.s32.totalorder (!%p241_p9), %s2383_s28, 1  ;;  %vm297_vm0 = vcmask (!%p241_p9), 1046528   ;;  %vm301_vm1 = vcmask (!%p241_p9), 523264  }
   0xe   : > { %244 = sbr.rel (%p241_p9) target bundleno = 1349 (0x545), region = 48  ;;  %v2029_v3 = vpack.c.bf16 (!%p241_p9), %v1559_v1, %v1558_v0  ;;  %v1561_v4 = vld [vmem:[%s2873_s1 + $0x58] sm:$0xff] (!%p241_p9)  ;;  %v1562_v6 = vld [vmem:[%s2873_s1 + $0x60] sm:$0xff] (!%p241_p9)  ;;  %v1563_v7 = vld [vmem:[%s2873_s1 + $0x68] sm:$0xff] (!%p241_p9)  ;;  %vm469_vm2 = vcmask (!%p241_p9), 1045504   ;;  %v2317_v44 = vmov (!%p241_p9), 0.0|0.0  }
   0xf   : > { %v2033_v5 = vpack.c.bf16 (!%p241_p9), %v1561_v4, %v1560_v2  ;;  %v1570_v8 = vld [vmem:[%s2873_s1 + $0x80] sm:$0xff] (!%p241_p9)  ;;  %v1571_v9 = vld [vmem:[%s2873_s1 + $0x88] sm:$0xff] (!%p241_p9)  ;;  %v1572_v11 = vld [vmem:[%s2873_s1 + $0x90] sm:$0xff] (!%p241_p9)  ;;  %v2037_v13 = vpack.c.bf16 (!%p241_p9), %v1563_v7, %v1562_v6  ;;  %vm2318_vm3 = vmmov (!%p241_p9), 0   ;;  %v2319_v45 = vmov (!%p241_p9), 0.0   ;;  %s1651_s19 = sshll.u32 (!%p241_p9), %s2383_s28, 4 }
  0x10   : > { %2030 = vmatprep.subr.bf16.mxu1 (!%p241_p9), %v2029_v3  ;;  %v2061_v10 = vpack.c.bf16 (!%p241_p9), %v1571_v9, %v1570_v8  ;;  %v1573_v12 = vld [vmem:[%s2873_s1 + $0x98] sm:$0xff] (!%p241_p9)  ;;  %v1564_v14 = vld [vmem:[%s2873_s1 + $0x70] sm:$0xff] (!%p241_p9)  ;;  %v1574_v16 = vld [vmem:[%s2873_s1 + $0xa0] sm:$0xff] (!%p241_p9)  ;;  %vm2320_vm4 = vmmov (!%p241_p9), 1   ;;  %vm566_vm6 = vcmask (!%p241_p9), 113664   ;;  %vm733_vm7 = vcmask (!%p241_p9), 916480   ;;  %s2829_s29 = scalar_lea.hbm (!%p241_p9), %s2879_s7, %s1651_s19 }
  0x11   : > { %2032 = vmatpush3.bf16.msra.mxu1 (!%p241_p9), %v2029_v3  ;;  %v2065_v15 = vpack.c.bf16 (!%p241_p9), %v1573_v12, %v1572_v11  ;;  %v1575_v17 = vld [vmem:[%s2873_s1 + $0xa8] sm:$0xff] (!%p241_p9)  ;;  %v1565_v18 = vld [vmem:[%s2873_s1 + $0x78] sm:$0xff] (!%p241_p9)  ;;  %v1576_v28 = vld [vmem:[%s2873_s1 + $0xb0] sm:$0xff] (!%p241_p9)  ;;  %vm901_vm8 = vcmask (!%p241_p9), 457728   ;;  %vm1468_vm9 = vcmask (!%p241_p9), 73728  }
  0x12   : > { %2034 = vmatprep.subr.bf16.mxu1 (!%p241_p9), %v2033_v5  ;;  %2062 = vmatprep.subr.bf16.mxu0 (!%p241_p9), %v2061_v10  ;;  %v2069_v24 = vpack.c.bf16 (!%p241_p9), %v1575_v17, %v1574_v16  ;;  %v2041_v26 = vpack.c.bf16 (!%p241_p9), %v1565_v18, %v1564_v14  ;;  %v1577_v29 = vld [vmem:[%s2873_s1 + $0xb8] sm:$0xff] (!%p241_p9)  ;;  %v278_v30 = vld [vmem:[%s2873_s1] sm:$0xff] (!%p241_p9)  ;;  %v279_v31 = vld [vmem:[%s2873_s1 + $0x8] sm:$0xff] (!%p241_p9) }
  0x13   : > { %2064 = vmatpush3.bf16.msra.mxu0 (!%p241_p9), %v2061_v10  ;;  %v2073_v33 = vpack.c.bf16 (!%p241_p9), %v1577_v29, %v1576_v28  ;;  %v2045_v34 = vpack.c.bf16 (!%p241_p9), %v279_v31, %v278_v30  ;;  %v280_v35 = vld [vmem:[%s2873_s1 + $0x10] sm:$0xff] (!%p241_p9)  ;;  %v281_v36 = vld [vmem:[%s2873_s1 + $0x18] sm:$0xff] (!%p241_p9)  ;;  %v282_v38 = vld [vmem:[%s2873_s1 + $0x20] sm:$0xff] (!%p241_p9) }
  0x14   : > { %2066 = vmatprep.subr.bf16.mxu0 (!%p241_p9), %v2065_v15  ;;  %v2049_v37 = vpack.c.bf16 (!%p241_p9), %v281_v36, %v280_v35  ;;  %v283_v39 = vld [vmem:[%s2873_s1 + $0x28] sm:$0xff] (!%p241_p9)  ;;  %v284_v41 = vld [vmem:[%s2873_s1 + $0x30] sm:$0xff] (!%p241_p9)  ;;  %v285_v42 = vld [vmem:[%s2873_s1 + $0x38] sm:$0xff] (!%p241_p9) }
  0x15   : > { %s272_s13 = scalar_select %p271_p10, %s2383_s28, 1  ;;  %2036 = vmatpush3.bf16.msra.mxu1 %v2033_v5  ;;  %v2053_v40 = vpack.c.bf16 %v283_v39, %v282_v38  ;;  %v2057_v43 = vpack.c.bf16 %v285_v42, %v284_v41  ;;  %v1580_v49 = vld [vmem:[%s2874_s2] ss:$0 sm:$0xff]  ;;  %vm2079_vm5 = vmpackc.low %vm469_vm2, %vm2320_vm4  ;;  %v720_v58 = vld [vmem:[%s2876_s4 + $0x8] sm:$0xff] }
  0x16   : > { %2038 = vmatprep.subr.bf16.mxu1 %v2037_v13  ;;  %v719_v57 = vld [vmem:[%s2876_s4] sm:$0xff]  ;;  %v1583_v61 = vld [vmem:[%s2875_s3 + $0x8] sm:$0x7f]  ;;  %v721_v63 = vld [vmem:[%s2876_s4 + $0x10] sm:$0xff]  ;;  %s2321_s28 = smov [#allocation2]  }
  0x17   : > { %s1654_s16 = sshll.u32 %s272_s13, 4  ;;  %2068 = vmatpush3.bf16.msra.mxu0 %v2065_v15  ;;  %v565_v60 = vld [vmem:[%s2875_s3] sm:$0x7f]  ;;  %v2086_v62 = vpack.c.bf16 %v720_v58, %v719_v57  ;;  %v722_v0 = vld [vmem:[%s2876_s4 + $0x18] sm:$0xff]  ;;  %v724_v3 = vld [vmem:[%s2876_s4 + $0x28] sm:$0xff]  ;;  %s2257_s13 = sshll.u32 %s2321_s28, 4  ;;  %s2258_s13 = int_to_ptr.vmem [resolvable:$false] %s2257_s13 }
  0x18   : > { %s275_s8 = scalar_lea.vmem %s2872_s0, %s1654_s16  ;;  %2070 = vmatprep.subr.bf16.mxu0 %v2069_v24  ;;  %v2089_v1 = vpack.c.bf16 %v722_v0, %v721_v63  ;;  %v723_v2 = vld [vmem:[%s2876_s4 + $0x20] sm:$0xff]  ;;  %v725_v5 = vld [vmem:[%s2876_s4 + $0x30] sm:$0xff]  ;;  %v726_v6 = vld [vmem:[%s2876_s4 + $0x38] sm:$0xff]  ;;  %s269_s16 = sand.u32 1, %s2307_s25  }
  0x19   : > { %v276_v19 = vld [vmem:[%s275_s8] sm:$0xff]  ;;  %v277_v20 = vld [vmem:[%s275_s8 + $0x8] sm:$0xff]  ;;  %2040 = vmatpush3.bf16.msra.mxu1 %v2037_v13  ;;  %v2092_v4 = vpack.c.bf16 %v724_v3, %v723_v2  ;;  %v2095_v7 = vpack.c.bf16 %v726_v6, %v725_v5  ;;  %v729_v11 = vld [vmem:[%s2876_s4 + $0x50] sm:$0xff]  ;;  %s270_s20 = scalar_lea.vmem [#allocation2], %s269_s16  ;;  %s1485_s8 = scalar_lea.sflag [#allocation3], %s269_s16 }
  0x1a   : > { %v298_v21 = vrot.slane %v276_v19, 1  ;;  %v299_v22 = vrot.slane %v277_v20, 1  ;;  %v470_v23 = vrot.slane %v276_v19, 2  ;;  %v471_v25 = vrot.slane %v277_v20, 2  ;;  %2042 = vmatprep.subr.bf16.mxu1 %v2041_v26  ;;  %v727_v8 = vld [vmem:[%s2876_s4 + $0x40] sm:$0xff]  ;;  %v728_v9 = vld [vmem:[%s2876_s4 + $0x48] sm:$0xff] }
  0x1b   : > { %2072 = vmatpush3.bf16.msra.mxu0 %v2069_v24  ;;  %v2098_v10 = vpack.c.bf16 %v728_v9, %v727_v8  ;;  %v730_v12 = vld [vmem:[%s2876_s4 + $0x58] sm:$0xff]  ;;  %v731_v14 = vld [vmem:[%s2876_s4 + $0x60] sm:$0xff]  ;;  %v732_v15 = vld [vmem:[%s2876_s4 + $0x68] sm:$0xff]  ;;  %s1497_s21 = sshll.u32 %s270_s20, 4  ;;  %s2259_s14 = scalar_lea.vmem %s2258_s13, 32  ;;  %s2831_s21 = int_to_ptr.vmem [resolvable:$true] %s1497_s21 }
  0x1c   : > { %v300_v27 = vsel %vm297_vm0, %v298_v21, %v299_v22  ;;  %v472_v32 = vsel %vm469_vm2, %v470_v23, %v471_v25  ;;  %2074 = vmatprep.subr.bf16.mxu0 %v2073_v33  ;;  %v2101_v13 = vpack.c.bf16 %v730_v12, %v729_v11  ;;  %v2104_v16 = vpack.c.bf16 %v732_v15, %v731_v14  ;;  %v1587_v17 = vld [vmem:[%s2876_s4 + $0x70] sm:$0xff]  ;;  %v1588_v18 = vld [vmem:[%s2876_s4 + $0x78] sm:$0xff]  ;;  %v1593_v31 = vld [vmem:[%s2876_s4 + $0xa0] sm:$0xff]  ;;  %s2253_s9 = scalar_lea.vmem %s2831_s21, 16  ;;  %p2260_p0 = scmp.lt.s32.totalorder %s2831_s21, %s2258_s13 }
  0x1d   : > { %1793 = vmatprep.mubr.msk.f32.mxu1 %vm301_vm1, %v300_v27  ;;  %1831 = vmatprep.mubr.msk.f32.mxu0 %vm301_vm1, %v472_v32  ;;  %v2107_v21 = vpack.c.bf16 %v1588_v18, %v1587_v17  ;;  %v1591_v28 = vld [vmem:[%s2876_s4 + $0x90] sm:$0xff]  ;;  %v1592_v29 = vld [vmem:[%s2876_s4 + $0x98] sm:$0xff]  ;;  %v1594_v32 = vld [vmem:[%s2876_s4 + $0xa8] sm:$0xff]  ;;  %p2254_p11 = scmp.ne.s32.totalorder %s2831_s21, %s2253_s9  ;;  %p2261_p1 = scmp.lt.s32.totalorder %s2259_s14, %s2253_s9 }
  0x1e   : > { %2044 = vmatpush3.bf16.msra.mxu1 %v2041_v26  ;;  %v1590_v26 = vld [vmem:[%s2876_s4 + $0x88] sm:$0xff]  ;;  %v2113_v30 = vpack.c.bf16 %v1592_v29, %v1591_v28  ;;  %v1596_v35 = vld [vmem:[%s2876_s4 + $0xb8] sm:$0xff]  ;;  %v898_v57 = vld [vmem:[%s2877_s5 + $0x20] sm:$0xff] }
  0x1f   : > { %2046 = vmatprep.subr.bf16.mxu1 %v2045_v34  ;;  %2076 = vmatpush3.bf16.msra.mxu0 %v2073_v33  ;;  %v2116_v33 = vpack.c.bf16 %v1594_v32, %v1593_v31  ;;  %v1598_v38 = vld [vmem:[%s2876_s4 + $0xc8] sm:$0xff]  ;;  %v1600_v41 = vld [vmem:[%s2876_s4 + $0xd8] sm:$0xff]  ;;  %v900_v63 = vld [vmem:[%s2877_s5 + $0x30] sm:$0xff]  ;;  %p2255_p12 = pnand %p2254_p11, %p2400_p5  ;;  %p2262_p2 = por %p2261_p1, %p2260_p0 }
  0x20   : > { %2077 = vmatprep.subr.bf16.mxu0 %v2317_v44  ;;  %v899_v58 = vld [vmem:[%s2877_s5 + $0x28] sm:$0xff]  ;;  %v1611_v3 = vld [vmem:[%s2877_s5 + $0x70] sm:$0xff]  ;;  %v1616_v14 = vld [vmem:[%s2877_s5 + $0x98] sm:$0xff] }
  0x21   : > { %1794 = vmatmul.mubr.msk.f32.vlgmr.msra.gmra.mrb[0].mxu1 %vm301_vm1, %v299_v22  ;;  %v1609_v0 = vld [vmem:[%s2877_s5 + $0x68] sm:$0xff]  ;;  %v1620_v17 = vld [vmem:[%s2877_s5 + $0xb0] sm:$0xff]  ;;  %v1617_v18 = vld [vmem:[%s2877_s5 + $0xa0] sm:$0xff]  ;;  %p2256_p13 = pneg %p2255_p12 }
  0x22   : > { %2048 = vmatpush3.bf16.msra.mxu1 %v2045_v34  ;;  %1812 = vmatprep.mubr.msk.f32.mxu1 %vm301_vm1, %v276_v19  ;;  %v1595_v34 = vld [vmem:[%s2876_s4 + $0xb0] sm:$0xff]  ;;  %v1614_v11 = vld [vmem:[%s2877_s5 + $0x88] sm:$0xff]  ;;  %v1625_v29 = vld [vmem:[%s2877_s5 + $0xd8] sm:$0xff] }
  0x23   : > { %2050 = vmatprep.subr.bf16.mxu1 %v2049_v37  ;;  %1832 = vmatmul.mubr.msk.f32.vlgmr.msra.gmra.mrb[0].mxu0 %vm301_vm1, %v471_v25  ;;  %v1589_v25 = vld [vmem:[%s2876_s4 + $0x80] sm:$0xff]  ;;  %v2119_v36 = vpack.c.bf16 %v1596_v35, %v1595_v34  ;;  %v1628_v28 = vld [vmem:[%s2877_s5 + $0xe8] sm:$0xff]  ;;  %v1629_v32 = vld [vmem:[%s2877_s5 + $0xf0] sm:$0xff]  ;;  %p2263_p3 = pnand %p2262_p2, %p2256_p13 }
  0x24   : > { %1838 = vmatprep.mubr.msk.f32.mxu0 %vm2318_vm3, %v2319_v45  ;;  %v2110_v27 = vpack.c.bf16 %v1590_v26, %v1589_v25  ;;  %v1624_v25 = vld [vmem:[%s2877_s5 + $0xd0] sm:$0xff]  ;;  %v1631_v35 = vld [vmem:[%s2877_s5 + $0x100] sm:$0xff] }
  0x26   : > { %2052 = vmatpush3.bf16.msra.mxu1 %v2049_v37  ;;  %v1597_v37 = vld [vmem:[%s2876_s4 + $0xc0] sm:$0xff] }
  0x27   : > { %2054 = vmatprep.subr.bf16.mxu1 %v2053_v40  ;;  %v2122_v39 = vpack.c.bf16 %v1598_v38, %v1597_v37  ;;  %v1635_v38 = vld [vmem:[%s2877_s5 + $0x118] sm:$0xff] }
  0x2a   : > { %2056 = vmatpush3.bf16.msra.mxu1 %v2053_v40  ;;  %v1599_v40 = vld [vmem:[%s2876_s4 + $0xd0] sm:$0xff] }
  0x2b   : > { %2058 = vmatprep.subr.bf16.mxu1 %v2057_v43  ;;  %v2125_v42 = vpack.c.bf16 %v1600_v41, %v1599_v40  ;;  %v1633_v40 = vld [vmem:[%s2877_s5 + $0x110] sm:$0xff] }
  0x2e   : > { %2060 = vmatpush3.bf16.msra.mxu1 %v2057_v43  ;;  %v894_v43 = vld [vmem:[%s2877_s5] sm:$0xff] }
  0x2f   : > { %2081 = vmatprep.subr.bf16.mxu1 %v2317_v44 }
  0x31   : > { %1813 = vmatmul.mubr.msk.f32.vlgmr.msra.gmra.mrb[0].mxu1 %vm301_vm1, %v277_v20 }
  0x32   : > { %1845 = vmatprep.mubr.msk.f32.mxu1 %vm2318_vm3, %v2319_v45 }
  0xf6   : > { %v1833_v46 = vpop.f32.mrb[0].mxu0 }
  0xf7   : > { %v543_v47 = vpop.f32.mrb[1].mxu0 }
 0x104   : > { %v1814_v48 = vpop.f32.mrb[0].mxu1 }
 0x105   : > { %v2190_v50 = vadd.f32 %v1833_v46, %v1814_v48  ;;  %v451_v51 = vpop.f32.mrb[1].mxu1  ;;  %v895_v46 = vld [vmem:[%s2877_s5 + $0x8] sm:$0xff] }
 0x106   : > { %v2191_v52 = vadd.f32 %v543_v47, %v451_v51  ;;  %v1603_v47 = vld [vmem:[%s2877_s5 + $0x38] sm:$0xff]  ;;  %v2128_v48 = vpack.c.bf16 %v895_v46, %v894_v43  ;;  %v1637_v43 = vld [vmem:[%s2877_s5 + $0x128] sm:$0xff]  ;;  %v1638_v46 = vld [vmem:[%s2877_s5 + $0x130] sm:$0xff] }
 0x107   : > { %v562_v53 = vadd.f32 %v2190_v50, %v1580_v49  ;;  %v896_v50 = vld [vmem:[%s2877_s5 + $0x10] sm:$0xff]  ;;  %v897_v51 = vld [vmem:[%s2877_s5 + $0x18] sm:$0xff] }
 0x108   : > { %v561_v54 = vadd.f32 %v2191_v52, %v1580_v49  ;;  %v1604_v49 = vld [vmem:[%s2877_s5 + $0x40] sm:$0xff] }
 0x109   : > { %v564_v55 = vmax.f32 %v562_v53, 0.0  ;;  %v2137_v52 = vpack.c.bf16 %v1604_v49, %v1603_v47  ;;  %v1605_v53 = vld [vmem:[%s2877_s5 + $0x48] sm:$0xff]  ;;  %v2176_v47 = vpack.c.bf16 %v1638_v46, %v1637_v43  ;;  %v1640_v49 = vld [vmem:[%s2877_s5 + $0x140] sm:$0xff] }
 0x10a   : > { %v563_v56 = vmax.f32 %v561_v54, 0.0  ;;  %v1606_v54 = vld [vmem:[%s2877_s5 + $0x50] sm:$0xff] }
 0x10c   : > { %v2078_v59 = vpack.c.bf16 %v564_v55, %v563_v56  ;;  %v2131_v55 = vpack.c.bf16 %v897_v51, %v896_v50  ;;  %v2140_v56 = vpack.c.bf16 %v1606_v54, %v1605_v53  ;;  %v1643_v51 = vld [vmem:[%s2877_s5 + $0x150] sm:$0xff]  ;;  %v1641_v53 = vld [vmem:[%s2877_s5 + $0x148] sm:$0xff] }
 0x10e   : > { %2080 = vmatpush3.bf16.msk.msra.mxu0 %vm2079_vm5, %v2078_v59  ;;  %2084 = vmatpush3.bf16.msk.msra.mxu1 %vm2079_vm5, %v2078_v59  ;;  %v1607_v59 = vld [vmem:[%s2877_s5 + $0x58] sm:$0xff] }
 0x10f   : > { %2085 = vmatprep.subr.bf16.mxu1 %v2317_v44  ;;  %2136 = vmatprep.subr.bf16.mxu0 %v2317_v44 }
 0x111   : > { %1839 = vmatmul.mubr.msk.f32.vlgmr.msra.gmra.mrb[2].mxu0 %vm566_vm6, %v565_v60  ;;  %1846 = vmatmul.mubr.msk.f32.vlgmr.msra.gmra.mrb[2].mxu1 %vm566_vm6, %v1583_v61  ;;  %v1608_v60 = vld [vmem:[%s2877_s5 + $0x60] sm:$0xff]  ;;  %v2134_v61 = vpack.c.bf16 %v899_v58, %v898_v57  ;;  %v1646_v57 = vld [vmem:[%s2877_s5 + $0x168] sm:$0xff] }
 0x112   : > { %2087 = vmatpush3.bf16.msra.mxu1 %v2086_v62  ;;  %1876 = vmatprep.mubr.msk.f32.mxu1 %vm2318_vm3, %v2319_v45  ;;  %v2143_v62 = vpack.c.bf16 %v1608_v60, %v1607_v59  ;;  %v1647_v59 = vld [vmem:[%s2877_s5 + $0x170] sm:$0xff]  ;;  %v1648_v60 = vld [vmem:[%s2877_s5 + $0x178] sm:$0xff] }
 0x113   : > { %2088 = vmatprep.subr.bf16.mxu1 %v2317_v44  ;;  %1941 = vmatprep.mubr.msk.f32.mxu0 %vm2318_vm3, %v2319_v45 }
 0x114   : > { %2138 = vmatpush3.bf16.msra.mxu0 %v2137_v52  ;;  %v1644_v52 = vld [vmem:[%s2877_s5 + $0x158] sm:$0xff] }
 0x115   : > { %2139 = vmatprep.subr.bf16.mxu0 %v2317_v44  ;;  %v2182_v54 = vpack.c.bf16 %v1644_v52, %v1643_v51 }
 0x116   : > { %2090 = vmatpush3.bf16.msra.mxu1 %v2089_v1 }
 0x117   : > { %2091 = vmatprep.subr.bf16.mxu1 %v2317_v44 }
 0x118   : > { %2141 = vmatpush3.bf16.msra.mxu0 %v2140_v56  ;;  %v1645_v56 = vld [vmem:[%s2877_s5 + $0x160] sm:$0xff] }
 0x119   : > { %2142 = vmatprep.subr.bf16.mxu0 %v2317_v44  ;;  %v2185_v58 = vpack.c.bf16 %v1646_v57, %v1645_v56 }
 0x11a   : > { %2093 = vmatpush3.bf16.msra.mxu1 %v2092_v4  ;;  %v1612_v4 = vld [vmem:[%s2877_s5 + $0x78] sm:$0xff] }
 0x11b   : > { %2094 = vmatprep.subr.bf16.mxu1 %v2317_v44  ;;  %v2146_v8 = vpack.c.bf16 %v1612_v4, %v1611_v3 }
 0x11c   : > { %2144 = vmatpush3.bf16.msra.mxu0 %v2143_v62  ;;  %v1649_v62 = vld [vmem:[%s2877_s5 + $0x180] sm:$0xff] }
 0x11d   : > { %1939 = vmatprep.subr.mxu0 %v2319_v45 }
 0x11e   : > { %2096 = vmatpush3.bf16.msra.mxu1 %v2095_v7 }
 0x11f   : > { %2097 = vmatprep.subr.bf16.mxu1 %v2317_v44 }
 0x120   : > { %1940 = vmatpush3.msra.mxu0 %v1609_v0 }
 0x121   : > { %2145 = vmatprep.subr.bf16.mxu0 %v2317_v44 }
 0x122   : > { %2099 = vmatpush3.bf16.msra.mxu1 %v2098_v10  ;;  %v1613_v10 = vld [vmem:[%s2877_s5 + $0x80] sm:$0xff] }
 0x123   : > { %2100 = vmatprep.subr.bf16.mxu1 %v2317_v44  ;;  %v2149_v12 = vpack.c.bf16 %v1614_v11, %v1613_v10 }
 0x126   : > { %2102 = vmatpush3.bf16.msra.mxu1 %v2101_v13  ;;  %v1615_v13 = vld [vmem:[%s2877_s5 + $0x90] sm:$0xff] }
 0x127   : > { %2103 = vmatprep.subr.bf16.mxu1 %v2317_v44  ;;  %v2152_v15 = vpack.c.bf16 %v1616_v14, %v1615_v13 }
 0x12a   : > { %2105 = vmatpush3.bf16.msra.mxu1 %v2104_v16  ;;  %v1619_v16 = vld [vmem:[%s2877_s5 + $0xa8] sm:$0xff] }
 0x12b   : > { %2106 = vmatprep.subr.bf16.mxu1 %v2317_v44 }
 0x1e4   : > { %v639_v19 = vpop.f32.mrb[2].mxu0  ;;  %v714_v20 = vpop.f32.mrb[2].mxu1 }
 0x1e5   : > { %v718_v22 = vmax.f32 %v639_v19, %v714_v20  ;;  %v1840_v23 = vpop.f32.mrb[3].mxu0  ;;  %v1847_v24 = vpop.f32.mrb[3].mxu1  ;;  %v2155_v19 = vpack.c.bf16 %v1620_v17, %v1619_v16 }
 0x1e6   : > { %v1623_v24 = vld [vmem:[%s2877_s5 + $0xc8] sm:$0xff] }
 0x1e7   : > { %1877 = vmatmul.mubr.msk.f32.vlgmr.msra.gmra.mrb[4].mxu1 %vm733_vm7, %v718_v22  ;;  %v2161_v26 = vpack.c.bf16 %v1624_v25, %v1623_v24 }
 0x1e8   : > { %2108 = vmatpush3.bf16.msra.mxu1 %v2107_v21  ;;  %1907 = vmatprep.mubr.msk.f32.mxu1 %vm2318_vm3, %v2319_v45  ;;  %v1621_v21 = vld [vmem:[%s2877_s5 + $0xb8] sm:$0xff] }
 0x1e9   : > { %2109 = vmatprep.subr.bf16.mxu1 %v2317_v44 }
 0x1ec   : > { %2111 = vmatpush3.bf16.msra.mxu1 %v2110_v27  ;;  %v1627_v27 = vld [vmem:[%s2877_s5 + $0xe0] sm:$0xff] }
 0x1ed   : > { %2112 = vmatprep.subr.bf16.mxu1 %v2317_v44 }
 0x1f0   : > { %2114 = vmatpush3.bf16.msra.mxu1 %v2113_v30  ;;  %v2164_v30 = vpack.c.bf16 %v1628_v28, %v1627_v27 }
 0x1f1   : > { %2115 = vmatprep.subr.bf16.mxu1 %v2317_v44 }
 0x1f4   : > { %2117 = vmatpush3.bf16.msra.mxu1 %v2116_v33  ;;  %v1630_v33 = vld [vmem:[%s2877_s5 + $0xf8] sm:$0xff] }
 0x1f5   : > { %2118 = vmatprep.subr.bf16.mxu1 %v2317_v44  ;;  %v2167_v34 = vpack.c.bf16 %v1630_v33, %v1629_v32 }
 0x1f8   : > { %2120 = vmatpush3.bf16.msra.mxu1 %v2119_v36  ;;  %v1632_v36 = vld [vmem:[%s2877_s5 + $0x108] sm:$0xff] }
 0x1f9   : > { %2121 = vmatprep.subr.bf16.mxu1 %v2317_v44  ;;  %v2170_v37 = vpack.c.bf16 %v1632_v36, %v1631_v35 }
 0x1fc   : > { %2123 = vmatpush3.bf16.msra.mxu1 %v2122_v39  ;;  %v1636_v39 = vld [vmem:[%s2877_s5 + $0x120] sm:$0xff] }
 0x1fd   : > { %2124 = vmatprep.subr.bf16.mxu1 %v2317_v44  ;;  %v2173_v41 = vpack.c.bf16 %v1636_v39, %v1635_v38 }
 0x200   : > { %2126 = vmatpush3.bf16.msra.mxu1 %v2125_v42 }
 0x201   : > { %2127 = vmatprep.subr.bf16.mxu1 %v2317_v44 }
 0x203   : > { %1908 = vmatmul.mubr.msk.f32.vlgmr.msra.gmra.mrb[6].mxu1 %vm733_vm7, %v718_v22  ;;  %v1622_v22 = vld [vmem:[%s2877_s5 + $0xc0] sm:$0xff] }
 0x204   : > { %1924 = vmatprep.mubr.msk.f32.mxu1 %vm2318_vm3, %v2319_v45  ;;  %2129 = vmatpush3.bf16.msra.mxu1 %v2128_v48  ;;  %v2158_v23 = vpack.c.bf16 %v1622_v22, %v1621_v21  ;;  %v1639_v48 = vld [vmem:[%s2877_s5 + $0x138] sm:$0xff] }
 0x205   : > { %2130 = vmatprep.subr.bf16.mxu1 %v2317_v44  ;;  %v2179_v50 = vpack.c.bf16 %v1640_v49, %v1639_v48 }
 0x208   : > { %2132 = vmatpush3.bf16.msra.mxu1 %v2131_v55 }
 0x209   : > { %2133 = vmatprep.subr.bf16.mxu1 %v2317_v44 }
 0x20c   : > { %2135 = vmatpush3.bf16.msra.mxu1 %v2134_v61  ;;  %v2188_v61 = vpack.c.bf16 %v1648_v60, %v1647_v59 }
 0x20d   : > { %1922 = vmatprep.subr.mxu1 %v2319_v45 }
 0x210   : > { %1923 = vmatpush3.msra.mxu1 %v900_v63 }
 0x2ba   : > { %v803_v1 = vpop.f32.mrb[4].mxu1 }
 0x2bb   : > { %v1878_v2 = vpop.f32.mrb[5].mxu1 }
 0x2bc   : > { %v893_v2 = vld [vmem:[%s2878_s6] sm:$0x1] }
 0x2d6   : > { %v888_v5 = vpop.f32.mrb[6].mxu1 }
 0x2d7   : > { %v2675_v6 = vmax.f32 %v803_v1, %v888_v5  ;;  %v1909_v7 = vpop.f32.mrb[7].mxu1 }
 0x2d9   : > { %1925 = vmatmul.mubr.msk.f32.vlgmr.msra.gmra.mrb[8].mxu1 %vm901_vm8, %v2675_v6  ;;  %v984_v9 = vrot.slane %v2675_v6, 1  ;;  %v1066_v20 = vrot.slane %v2675_v6, 2  ;;  %v1148_v31 = vrot.slane %v2675_v6, 3  ;;  %v1230_v42 = vrot.slane %v2675_v6, 4 }
 0x2da   : > { %v1312_v55 = vrot.slane %v2675_v6, 5  ;;  %v1394_v63 = vrot.slane %v2675_v6, 6 }
 0x2db   : > { %1942 = vmatmul.mubr.msk.f32.vlgmr.msra.gmra.mrb[4].mxu0 %vm901_vm8, %v984_v9 }
 0x2dc   : > { %2147 = vmatpush3.bf16.msra.mxu0 %v2146_v8  ;;  %1958 = vmatprep.mubr.msk.f32.mxu0 %vm2318_vm3, %v2319_v45 }
 0x2dd   : > { %2148 = vmatprep.subr.bf16.mxu0 %v2317_v44 }
 0x2e0   : > { %2150 = vmatpush3.bf16.msra.mxu0 %v2149_v12 }
 0x2e1   : > { %2151 = vmatprep.subr.bf16.mxu0 %v2317_v44 }
 0x2e4   : > { %2153 = vmatpush3.bf16.msra.mxu0 %v2152_v15 }
 0x2e5   : > { %1956 = vmatprep.subr.mxu0 %v2319_v45 }
 0x2e8   : > { %1957 = vmatpush3.msra.mxu0 %v1617_v18 }
 0x2e9   : > { %1959 = vmatmul.mubr.msk.f32.vlgmr.msra.gmra.mrb[4].mxu0 %vm901_vm8, %v1066_v20  ;;  %2154 = vmatprep.subr.bf16.mxu0 %v2317_v44 }
 0x2ea   : > { %2156 = vmatpush3.bf16.msra.mxu0 %v2155_v19  ;;  %1975 = vmatprep.mubr.msk.f32.mxu0 %vm2318_vm3, %v2319_v45 }
 0x2eb   : > { %2157 = vmatprep.subr.bf16.mxu0 %v2317_v44 }
 0x2ee   : > { %2159 = vmatpush3.bf16.msra.mxu0 %v2158_v23 }
 0x2ef   : > { %2160 = vmatprep.subr.bf16.mxu0 %v2317_v44 }
 0x2f2   : > { %2162 = vmatpush3.bf16.msra.mxu0 %v2161_v26 }
 0x2f3   : > { %1973 = vmatprep.subr.mxu0 %v2319_v45 }
 0x2f6   : > { %1974 = vmatpush3.msra.mxu0 %v1625_v29 }
 0x2f7   : > { %1976 = vmatmul.mubr.msk.f32.vlgmr.msra.gmra.mrb[4].mxu0 %vm901_vm8, %v1148_v31  ;;  %2163 = vmatprep.subr.bf16.mxu0 %v2317_v44 }
 0x2f8   : > { %2165 = vmatpush3.bf16.msra.mxu0 %v2164_v30  ;;  %1992 = vmatprep.mubr.msk.f32.mxu0 %vm2318_vm3, %v2319_v45 }
 0x2f9   : > { %2166 = vmatprep.subr.bf16.mxu0 %v2317_v44 }
 0x2fc   : > { %2168 = vmatpush3.bf16.msra.mxu0 %v2167_v34 }
 0x2fd   : > { %2169 = vmatprep.subr.bf16.mxu0 %v2317_v44 }
 0x300   : > { %2171 = vmatpush3.bf16.msra.mxu0 %v2170_v37 }
 0x301   : > { %1990 = vmatprep.subr.mxu0 %v2319_v45 }
 0x304   : > { %1991 = vmatpush3.msra.mxu0 %v1633_v40 }
 0x305   : > { %1993 = vmatmul.mubr.msk.f32.vlgmr.msra.gmra.mrb[4].mxu0 %vm901_vm8, %v1230_v42  ;;  %2172 = vmatprep.subr.bf16.mxu0 %v2317_v44 }
 0x306   : > { %2174 = vmatpush3.bf16.msra.mxu0 %v2173_v41  ;;  %2009 = vmatprep.mubr.msk.f32.mxu0 %vm2318_vm3, %v2319_v45 }
 0x307   : > { %2175 = vmatprep.subr.bf16.mxu0 %v2317_v44 }
 0x30a   : > { %2177 = vmatpush3.bf16.msra.mxu0 %v2176_v47 }
 0x30b   : > { %2178 = vmatprep.subr.bf16.mxu0 %v2317_v44 }
 0x30e   : > { %2180 = vmatpush3.bf16.msra.mxu0 %v2179_v50 }
 0x30f   : > { %2007 = vmatprep.subr.mxu0 %v2319_v45 }
 0x312   : > { %2008 = vmatpush3.msra.mxu0 %v1641_v53 }
 0x313   : > { %2010 = vmatmul.mubr.msk.f32.vlgmr.msra.gmra.mrb[4].mxu0 %vm901_vm8, %v1312_v55  ;;  %2181 = vmatprep.subr.bf16.mxu0 %v2317_v44 }
 0x314   : > { %2183 = vmatpush3.bf16.msra.mxu0 %v2182_v54  ;;  %2026 = vmatprep.mubr.msk.f32.mxu0 %vm2318_vm3, %v2319_v45 }
 0x315   : > { %2184 = vmatprep.subr.bf16.mxu0 %v2317_v44 }
 0x318   : > { %2186 = vmatpush3.bf16.msra.mxu0 %v2185_v58 }
 0x319   : > { %2187 = vmatprep.subr.bf16.mxu0 %v2317_v44 }
 0x31c   : > { %2189 = vmatpush3.bf16.msra.mxu0 %v2188_v61 }
 0x31d   : > { %2024 = vmatprep.subr.mxu0 %v2319_v45 }
 0x320   : > { %2025 = vmatpush3.msra.mxu0 %v1649_v62 }
 0x321   : > { %2027 = vmatmul.mubr.msk.f32.vlgmr.msra.gmra.mrb[4].mxu0 %vm901_vm8, %v1394_v63 }
 0x3ac   : > { %v971_v0 = vpop.f32.mrb[8].mxu1 }
 0x3ad   : > { %v1926_v1 = vpop.f32.mrb[9].mxu1  ;;  %v975_v3 = vadd.f32 %v971_v0, %v893_v2 }
 0x3f4   : > { %v1463_v44 = vpop.f32.mrb[4].mxu0 }
 0x3f5   : > { %v2193_v45 = vadd.f32 %v1463_v44, %v975_v3  ;;  %v2028_v4 = vpop.f32.mrb[5].mxu0 }
 0x3f7   : > { %v1469_v5 = vsel %vm1468_vm9, %v2193_v45, -inf }
 0x3f8   : > { %1470 = vmax.xlane.f32.xlu0 %v1469_v5 }
 0x485   : > { %v1471_v6 = vpop.xlane.xlu0 %1470 }
 0x486   : > { %v1472_v7 = vsub.f32 %v2193_v45, %v1471_v6 }
 0x488   : > { %v1473_v8 = vmul.f32 1.442695, %v1472_v7 }
 0x48a   : > { %2249 = vpow2.f32 %v1473_v8 }
 0x494   : > { %v2250_v9 = vpop.eup %2249 }
 0x495   : > { %v1475_v10 = vsel %vm1468_vm9, %v2250_v9, 0.0 }
 0x496   : > { %1476 = vadd.xlane.f32.xlu0 %v1475_v10 }
 0x523   : > { %v1477_v11 = vpop.xlane.xlu0 %1476 }
 0x524   : > { %2251 = vrcp.f32 %v1477_v11 }
 0x52e   : > { %v2252_v12 = vpop.eup %2251 }
 0x52f   : > { %v1479_v13 = vmul.f32 %v2252_v12, %v1477_v11 }
 0x531   : > { %v1480_v14 = vsub.f32 2.0, %v1479_v13 }
 0x533   : > { %v1481_v15 = vmul.f32 %v2252_v12, %v1480_v14 }
 0x535   : > { %v1482_v16 = vmul.f32 %v2250_v9, %v1481_v15 }
 0x537   : > { %1483 = vst.msk [vmem:[%s270_s20] sm:$0x1] %vm1468_vm9, %v1482_v16 }
 0x538   : > { %2266 = shalt.err (!%p2263_p3)
}
 0x539   : > { %s2267_s15 = scalar_lea.hbm %s2829_s29, 16  ;;  %s2271_s16 = scalar_lea.hbm %s2879_s7, 32 }
 0x53a   : > { %p2268_p4 = scmp.ne.s32.totalorder %s2829_s29, %s2267_s15  ;;  %p2272_p9 = scmp.lt.u32.totalorder %s2829_s29, %s2879_s7 }
 0x53b   : > { %p2273_p10 = scmp.lt.u32.totalorder %s2271_s16, %s2267_s15  ;;  %p2275_p12 = scmp.lt.u32.totalorder %s2267_s15, %s2829_s29 }
 0x53c   : > { %p2269_p7 = pnand %p2268_p4, %p2400_p5 }
 0x53d   : > { %p2274_p11 = por %p2273_p10, %p2272_p9 }
 0x53e   : > { %p2270_p8 = pneg %p2269_p7 }
 0x53f   : > { %p2276_p13 = por %p2275_p12, %p2274_p11 }
 0x541   : > { %p2277_p0 = pnand %p2276_p13, %p2270_p8 }
 0x543   : > { %2280 = shalt.err (!%p2277_p0)
}
 0x544   : > { %2206 = dma.vmem_to_hbm [thread:$0]  (%p2400_p5), %s2831_s21, 16, %s2829_s29, %s1485_s8  }
 0x545 PF: > { %p2212_p1 = scmp.ge.s32.totalorder %s2315_s27, 2  ;;  %s1509_s22 = sand.u32 1, %s2303_s24  }
 0x546   : > { %s1510_s23 = scalar_lea.sflag [#allocation3], %s1509_s22 }
 0x547   : > { %p2209_p2 = pnand %p2212_p1, %p2404_p6 }
 0x549   : > { %2298 = dma.done.wait (!%p2209_p2), %s1510_s23, 16  }
 0x54a   : > { %2300 = vsyncadd (!%p2209_p2), %s1510_s23, 4294967280  ;;  %p17_p3 = scmp.ge.s32.totalorder %s2387_s30, 4   ;;  %s2882_s24 = smov %s2307_s25 }
 0x54b   : > { %s2883_s25 = smov %s2311_s26  ;;  %s2884_s26 = smov %s2398_s10 }
 0x54c   : > { %s2885_s27 = smov %s2387_s30  ;;  %19 = sbr.rel (!%p17_p3) target bundleno = 3 (0x3), region = 93 }
 0x553   :  { %1514 = vsyncpa [#allocation3], 1 }
 0x554   :  { %1516 = vsyncpa [#allocation3 + $0x1], 1 }

</bundles_post_ra>
